<compile_context>
chip_gen: v5e
topology: v5e:2x2
jax: 0.10.0
libtpu: 0.0.40
codegen_flags: <defaults>
</compile_context>

<pallas_src>
import functools

import jax
import jax.numpy as jnp
from jax.experimental import pallas as pl
from jax.experimental.pallas import tpu as pltpu


# ---------------------------------------------------------------------------
# Single fused MHA kernel.
# Inputs are batch-major 2-D activations:
#   xq: (N*L, E)  rows ordered batch-major (batch n occupies rows n*L..n*L+L)
#   xk, xv: (N*S, E)
# Weights are already transposed to (E, E) so the contraction is a plain
# x @ W_t (no in-kernel or per-call transposes), biases are (1, E).
# Output: (N*L, E), batch-major.
# ---------------------------------------------------------------------------
def _mha_fused_kernel(
    xq_ref, xk_ref, xv_ref,
    wq_ref, wk_ref, wv_ref, wo_ref,
    bq_ref, bk_ref, bv_ref, bo_ref,
    o_ref,
    *, num_heads, n_batch, q_len, kv_len, scale,
):
    E = xq_ref.shape[-1]
    H, N, L, S = num_heads, n_batch, q_len, kv_len
    Dh = E // H

    # ---- input projections (single launch, three MXU matmuls) ----
    q_p = jnp.dot(xq_ref[...], wq_ref[...],
                  preferred_element_type=jnp.float32) + bq_ref[...]
    k_p = jnp.dot(xk_ref[...], wk_ref[...],
                  preferred_element_type=jnp.float32) + bk_ref[...]
    v_p = jnp.dot(xv_ref[...], wv_ref[...],
                  preferred_element_type=jnp.float32) + bv_ref[...]

    # ---- per-(batch, head) scaled-dot-product attention ----
    # Static unrolled loop (N*H = 8 iterations) over lane-dense slices; no
    # (N*H, L, Dh) materialization, no grid, no head transposes.
    batch_ctx = []
    for n in range(N):
        q_n = q_p[n * L:(n + 1) * L, :]          # (L, E) contiguous rows
        k_n = k_p[n * S:(n + 1) * S, :]          # (S, E)
        v_n = v_p[n * S:(n + 1) * S, :]          # (S, E)
        head_ctx = []
        for h in range(H):
            lo, hi = h * Dh, (h + 1) * Dh
            q_nh = q_n[:, lo:hi]                 # (L, Dh)
            k_nh = k_n[:, lo:hi]                 # (S, Dh)
            v_nh = v_n[:, lo:hi]                 # (S, Dh)

            # scores = q @ k^T  (contract last dims; no explicit transpose)
            s = jax.lax.dot_general(
                q_nh, k_nh, (((1,), (1,)), ((), ())),
                preferred_element_type=jnp.float32,
            ) * scale                            # (L, S)

            m = jnp.max(s, axis=-1, keepdims=True)
            p = jnp.exp(s - m)
            p = p * pl.reciprocal(jnp.sum(p, axis=-1, keepdims=True),
                                  approx=True)

            head_ctx.append(
                jnp.dot(p, v_nh, preferred_element_type=jnp.float32)
            )                                    # (L, Dh)
        # merge heads back to lane-dense (L, E) via lane concat
        batch_ctx.append(jnp.concatenate(head_ctx, axis=-1))

    ctx = jnp.concatenate(batch_ctx, axis=0)     # (N*L, E), batch-major

    # ---- output projection ----
    o_ref[...] = (
        jnp.dot(ctx, wo_ref[...], preferred_element_type=jnp.float32)
        + bo_ref[...]
    )


# ---------------------------------------------------------------------------
# Wrapper: layout glue (cheap XLA reshapes/transposes of a few KiB) + one
# pallas_call for the whole forward.
# ---------------------------------------------------------------------------
def multihead_attention_forward(q, k, v, prepared):
    """q:(L,N,E), k/v:(S,N,E) -> (L,N,E). PyTorch batch_first=False layout."""
    L, N, E = q.shape
    S = k.shape[0]
    H = prepared["num_heads"]
    Dh = E // H
    scale = 1.0 / (Dh ** 0.5)

    # (L,N,E) -> batch-major 2-D (N*L, E): contiguous rows per batch.
    xq = jnp.transpose(q, (1, 0, 2)).reshape(N * L, E)
    xk = jnp.transpose(k, (1, 0, 2)).reshape(N * S, E)
    xv = jnp.transpose(v, (1, 0, 2)).reshape(N * S, E)

    kern = functools.partial(
        _mha_fused_kernel,
        num_heads=H, n_batch=N, q_len=L, kv_len=S, scale=scale,
    )

    out2d = pl.pallas_call(
        kern,
        out_shape=jax.ShapeDtypeStruct((N * L, E), jnp.float32),
    )(
        xq, xk, xv,
        prepared["wq_t"], prepared["wk_t"], prepared["wv_t"], prepared["wo_t"],
        prepared["bq"], prepared["bk"], prepared["bv"], prepared["bo"],
    )

    # back to PyTorch (L, N, E)
    return out2d.reshape(N, L, E).transpose(1, 0, 2)


# ---------------------------------------------------------------------------
# Parameters: PyTorch-style construction, then a one-time preparation step
# (split + transpose) so the per-forward path never transposes weights.
# ---------------------------------------------------------------------------
def make_params(key, embed_dim, num_heads):
    k1, k2 = jax.random.split(key, 2)
    scale = 1.0 / (embed_dim ** 0.5)
    return {
        "num_heads": num_heads,
        "in_proj_weight": jax.random.uniform(
            k1, (3 * embed_dim, embed_dim), jnp.float32, -scale, scale
        ),
        "in_proj_bias": jnp.zeros((3 * embed_dim,), jnp.float32),
        "out_proj_weight": jax.random.uniform(
            k2, (embed_dim, embed_dim), jnp.float32, -scale, scale
        ),
        "out_proj_bias": jnp.zeros((embed_dim,), jnp.float32),
    }


def prepare_params(params):
    """One-time: split in_proj, transpose all weights, reshape biases."""
    E = params["out_proj_weight"].shape[0]
    in_w = params["in_proj_weight"]
    in_b = params["in_proj_bias"]
    return {
        "num_heads": params["num_heads"],
        "wq_t": in_w[:E].T,                      # (E, E)
        "wk_t": in_w[E:2 * E].T,
        "wv_t": in_w[2 * E:].T,
        "wo_t": params["out_proj_weight"].T,     # (E, E)
        "bq": in_b[:E].reshape(1, E),
        "bk": in_b[E:2 * E].reshape(1, E),
        "bv": in_b[2 * E:].reshape(1, E),
        "bo": params["out_proj_bias"].reshape(1, E),
    }


# ---------------------------------------------------------------------------
# Pure-JAX reference (for a cheap self-check).
# ---------------------------------------------------------------------------
def _mha_reference(q, k, v, prepared):
    L, N, E = q.shape
    S = k.shape[0]
    H = prepared["num_heads"]
    Dh = E // H
    scale = 1.0 / (Dh ** 0.5)
    q_p = q.reshape(L * N, E) @ prepared["wq_t"] + prepared["bq"]
    k_p = k.reshape(S * N, E) @ prepared["wk_t"] + prepared["bk"]
    v_p = v.reshape(S * N, E) @ prepared["wv_t"] + prepared["bv"]
    qh = q_p.reshape(L, N, H, Dh)
    kh = k_p.reshape(S, N, H, Dh)
    vh = v_p.reshape(S, N, H, Dh)
    s = jnp.einsum("lnhd,snhd->nhls", qh, kh) * scale
    p = jax.nn.softmax(s, axis=-1)
    ctx = jnp.einsum("nhls,snhd->lnhd", p, vh).reshape(L * N, E)
    out = ctx @ prepared["wo_t"] + prepared["bo"]
    return out.reshape(L, N, E)


if __name__ == "__main__":
    E, H = 32, 4          # embed_dim, num_heads (head_dim = 8)
    L, S, N = 8, 8, 2     # target seq, source seq, batch

    root = jax.random.PRNGKey(0)
    kp, kq, kk, kv = jax.random.split(root, 4)

    params = make_params(kp, E, H)
    prepared = prepare_params(params)          # one-time weight prep

    q = jax.random.normal(kq, (L, N, E), jnp.float32)
    k = jax.random.normal(kk, (S, N, E), jnp.float32)
    v = jax.random.normal(kv, (S, N, E), jnp.float32)

    fwd = jax.jit(lambda a, b, c: multihead_attention_forward(a, b, c, prepared))
    out = fwd(q, k, v)
    jax.block_until_ready(out)

    assert out.shape == (L, N, E)
    ref = _mha_reference(q, k, v, prepared)
    assert jnp.allclose(out, ref, rtol=1e-2, atol=1e-2), "mismatch vs reference"
    print("KERNEL_OK")
</pallas_src>

<mosaic_0001>
module attributes {stable_mosaic.version = 11 : i64} {
  func.func @_mha_fused_kernel(%arg0: memref<16x32xf32, #tpu.memory_space<vmem>>, %arg1: memref<16x32xf32, #tpu.memory_space<vmem>>, %arg2: memref<16x32xf32, #tpu.memory_space<vmem>>, %arg3: memref<32x32xf32, #tpu.memory_space<vmem>>, %arg4: memref<32x32xf32, #tpu.memory_space<vmem>>, %arg5: memref<32x32xf32, #tpu.memory_space<vmem>>, %arg6: memref<32x32xf32, #tpu.memory_space<vmem>>, %arg7: memref<1x32xf32, #tpu.memory_space<vmem>>, %arg8: memref<1x32xf32, #tpu.memory_space<vmem>>, %arg9: memref<1x32xf32, #tpu.memory_space<vmem>>, %arg10: memref<1x32xf32, #tpu.memory_space<vmem>>, %arg11: memref<16x32xf32, #tpu.memory_space<vmem>>) attributes {dimension_semantics = [], scalar_prefetch = 0 : i64, scratch_operands = 0 : i64, tpu.core_type = #tpu.core_type<tc>} {
    %c0 = arith.constant 0 : index
    %c0_0 = arith.constant 0 : index
    %0 = vector.load %arg0[%c0, %c0_0] : memref<16x32xf32, #tpu.memory_space<vmem>>, vector<16x32xf32>
    %c0_1 = arith.constant 0 : index
    %c0_2 = arith.constant 0 : index
    %1 = vector.load %arg3[%c0_1, %c0_2] : memref<32x32xf32, #tpu.memory_space<vmem>>, vector<32x32xf32>
    %cst = arith.constant dense<0.000000e+00> : vector<16x32xf32>
    %2 = tpu.matmul %0, %1, %cst {dimension_numbers = #tpu.dot_dimension_numbers<[1], [0], [0], [1], [0, 0, 1, 1], [], []>} : vector<16x32xf32>, vector<32x32xf32>, vector<16x32xf32> -> vector<16x32xf32>
    %c0_3 = arith.constant 0 : index
    %c0_4 = arith.constant 0 : index
    %3 = vector.load %arg7[%c0_3, %c0_4] : memref<1x32xf32, #tpu.memory_space<vmem>>, vector<1x32xf32>
    %4 = vector.broadcast %3 : vector<1x32xf32> to vector<16x32xf32>
    %5 = arith.addf %2, %4 : vector<16x32xf32>
    %c0_5 = arith.constant 0 : index
    %c0_6 = arith.constant 0 : index
    %6 = vector.load %arg1[%c0_5, %c0_6] : memref<16x32xf32, #tpu.memory_space<vmem>>, vector<16x32xf32>
    %c0_7 = arith.constant 0 : index
    %c0_8 = arith.constant 0 : index
    %7 = vector.load %arg4[%c0_7, %c0_8] : memref<32x32xf32, #tpu.memory_space<vmem>>, vector<32x32xf32>
    %cst_9 = arith.constant dense<0.000000e+00> : vector<16x32xf32>
    %8 = tpu.matmul %6, %7, %cst_9 {dimension_numbers = #tpu.dot_dimension_numbers<[1], [0], [0], [1], [0, 0, 1, 1], [], []>} : vector<16x32xf32>, vector<32x32xf32>, vector<16x32xf32> -> vector<16x32xf32>
    %c0_10 = arith.constant 0 : index
    %c0_11 = arith.constant 0 : index
    %9 = vector.load %arg8[%c0_10, %c0_11] : memref<1x32xf32, #tpu.memory_space<vmem>>, vector<1x32xf32>
    %10 = vector.broadcast %9 : vector<1x32xf32> to vector<16x32xf32>
    %11 = arith.addf %8, %10 : vector<16x32xf32>
    %c0_12 = arith.constant 0 : index
    %c0_13 = arith.constant 0 : index
    %12 = vector.load %arg2[%c0_12, %c0_13] : memref<16x32xf32, #tpu.memory_space<vmem>>, vector<16x32xf32>
    %c0_14 = arith.constant 0 : index
    %c0_15 = arith.constant 0 : index
    %13 = vector.load %arg5[%c0_14, %c0_15] : memref<32x32xf32, #tpu.memory_space<vmem>>, vector<32x32xf32>
    %cst_16 = arith.constant dense<0.000000e+00> : vector<16x32xf32>
    %14 = tpu.matmul %12, %13, %cst_16 {dimension_numbers = #tpu.dot_dimension_numbers<[1], [0], [0], [1], [0, 0, 1, 1], [], []>} : vector<16x32xf32>, vector<32x32xf32>, vector<16x32xf32> -> vector<16x32xf32>
    %c0_17 = arith.constant 0 : index
    %c0_18 = arith.constant 0 : index
    %15 = vector.load %arg9[%c0_17, %c0_18] : memref<1x32xf32, #tpu.memory_space<vmem>>, vector<1x32xf32>
    %16 = vector.broadcast %15 : vector<1x32xf32> to vector<16x32xf32>
    %17 = arith.addf %14, %16 : vector<16x32xf32>
    %18 = vector.extract_strided_slice %5 {offsets = [0, 0], sizes = [8, 32], strides = [1, 1]} : vector<16x32xf32> to vector<8x32xf32>
    %19 = vector.extract_strided_slice %11 {offsets = [0, 0], sizes = [8, 32], strides = [1, 1]} : vector<16x32xf32> to vector<8x32xf32>
    %20 = vector.extract_strided_slice %17 {offsets = [0, 0], sizes = [8, 32], strides = [1, 1]} : vector<16x32xf32> to vector<8x32xf32>
    %21 = vector.extract_strided_slice %18 {offsets = [0, 0], sizes = [8, 8], strides = [1, 1]} : vector<8x32xf32> to vector<8x8xf32>
    %22 = vector.extract_strided_slice %19 {offsets = [0, 0], sizes = [8, 8], strides = [1, 1]} : vector<8x32xf32> to vector<8x8xf32>
    %23 = vector.extract_strided_slice %20 {offsets = [0, 0], sizes = [8, 8], strides = [1, 1]} : vector<8x32xf32> to vector<8x8xf32>
    %cst_19 = arith.constant dense<0.000000e+00> : vector<8x8xf32>
    %24 = tpu.matmul %21, %22, %cst_19 {dimension_numbers = #tpu.dot_dimension_numbers<[1], [1], [0], [0], [0, 0, 1, 0], [], []>} : vector<8x8xf32>, vector<8x8xf32>, vector<8x8xf32> -> vector<8x8xf32>
    %cst_20 = arith.constant 0.353553385 : f32
    %25 = vector.broadcast %cst_20 : f32 to vector<8x8xf32>
    %26 = arith.mulf %24, %25 : vector<8x8xf32>
    %cst_21 = arith.constant dense<0xFF800000> : vector<8xf32>
    %27 = vector.multi_reduction <maximumf>, %26, %cst_21 [1] : vector<8x8xf32> to vector<8xf32>
    %28 = vector.shape_cast %27 : vector<8xf32> to vector<8x1xf32>
    %29 = vector.broadcast %28 : vector<8x1xf32> to vector<8x8xf32>
    %30 = arith.subf %26, %29 : vector<8x8xf32>
    %31 = math.exp %30 : vector<8x8xf32>
    %cst_22 = arith.constant dense<0.000000e+00> : vector<8xf32>
    %32 = vector.multi_reduction <add>, %31, %cst_22 [1] : vector<8x8xf32> to vector<8xf32>
    %33 = vector.shape_cast %32 : vector<8xf32> to vector<8x1xf32>
    %34 = tpu.reciprocal %33 {approx = true} : vector<8x1xf32> -> vector<8x1xf32>
    %35 = vector.broadcast %34 : vector<8x1xf32> to vector<8x8xf32>
    %36 = arith.mulf %31, %35 : vector<8x8xf32>
    %cst_23 = arith.constant dense<0.000000e+00> : vector<8x8xf32>
    %37 = tpu.matmul %36, %23, %cst_23 {dimension_numbers = #tpu.dot_dimension_numbers<[1], [0], [0], [1], [0, 0, 1, 1], [], []>} : vector<8x8xf32>, vector<8x8xf32>, vector<8x8xf32> -> vector<8x8xf32>
    %38 = vector.extract_strided_slice %18 {offsets = [0, 8], sizes = [8, 8], strides = [1, 1]} : vector<8x32xf32> to vector<8x8xf32>
    %39 = vector.extract_strided_slice %19 {offsets = [0, 8], sizes = [8, 8], strides = [1, 1]} : vector<8x32xf32> to vector<8x8xf32>
    %40 = vector.extract_strided_slice %20 {offsets = [0, 8], sizes = [8, 8], strides = [1, 1]} : vector<8x32xf32> to vector<8x8xf32>
    %cst_24 = arith.constant dense<0.000000e+00> : vector<8x8xf32>
    %41 = tpu.matmul %38, %39, %cst_24 {dimension_numbers = #tpu.dot_dimension_numbers<[1], [1], [0], [0], [0, 0, 1, 0], [], []>} : vector<8x8xf32>, vector<8x8xf32>, vector<8x8xf32> -> vector<8x8xf32>
    %cst_25 = arith.constant 0.353553385 : f32
    %42 = vector.broadcast %cst_25 : f32 to vector<8x8xf32>
    %43 = arith.mulf %41, %42 : vector<8x8xf32>
    %cst_26 = arith.constant dense<0xFF800000> : vector<8xf32>
    %44 = vector.multi_reduction <maximumf>, %43, %cst_26 [1] : vector<8x8xf32> to vector<8xf32>
    %45 = vector.shape_cast %44 : vector<8xf32> to vector<8x1xf32>
    %46 = vector.broadcast %45 : vector<8x1xf32> to vector<8x8xf32>
    %47 = arith.subf %43, %46 : vector<8x8xf32>
    %48 = math.exp %47 : vector<8x8xf32>
    %cst_27 = arith.constant dense<0.000000e+00> : vector<8xf32>
    %49 = vector.multi_reduction <add>, %48, %cst_27 [1] : vector<8x8xf32> to vector<8xf32>
    %50 = vector.shape_cast %49 : vector<8xf32> to vector<8x1xf32>
    %51 = tpu.reciprocal %50 {approx = true} : vector<8x1xf32> -> vector<8x1xf32>
    %52 = vector.broadcast %51 : vector<8x1xf32> to vector<8x8xf32>
    %53 = arith.mulf %48, %52 : vector<8x8xf32>
    %cst_28 = arith.constant dense<0.000000e+00> : vector<8x8xf32>
    %54 = tpu.matmul %53, %40, %cst_28 {dimension_numbers = #tpu.dot_dimension_numbers<[1], [0], [0], [1], [0, 0, 1, 1], [], []>} : vector<8x8xf32>, vector<8x8xf32>, vector<8x8xf32> -> vector<8x8xf32>
    %55 = vector.extract_strided_slice %18 {offsets = [0, 16], sizes = [8, 8], strides = [1, 1]} : vector<8x32xf32> to vector<8x8xf32>
    %56 = vector.extract_strided_slice %19 {offsets = [0, 16], sizes = [8, 8], strides = [1, 1]} : vector<8x32xf32> to vector<8x8xf32>
    %57 = vector.extract_strided_slice %20 {offsets = [0, 16], sizes = [8, 8], strides = [1, 1]} : vector<8x32xf32> to vector<8x8xf32>
    %cst_29 = arith.constant dense<0.000000e+00> : vector<8x8xf32>
    %58 = tpu.matmul %55, %56, %cst_29 {dimension_numbers = #tpu.dot_dimension_numbers<[1], [1], [0], [0], [0, 0, 1, 0], [], []>} : vector<8x8xf32>, vector<8x8xf32>, vector<8x8xf32> -> vector<8x8xf32>
    %cst_30 = arith.constant 0.353553385 : f32
    %59 = vector.broadcast %cst_30 : f32 to vector<8x8xf32>
    %60 = arith.mulf %58, %59 : vector<8x8xf32>
    %cst_31 = arith.constant dense<0xFF800000> : vector<8xf32>
    %61 = vector.multi_reduction <maximumf>, %60, %cst_31 [1] : vector<8x8xf32> to vector<8xf32>
    %62 = vector.shape_cast %61 : vector<8xf32> to vector<8x1xf32>
    %63 = vector.broadcast %62 : vector<8x1xf32> to vector<8x8xf32>
    %64 = arith.subf %60, %63 : vector<8x8xf32>
    %65 = math.exp %64 : vector<8x8xf32>
    %cst_32 = arith.constant dense<0.000000e+00> : vector<8xf32>
    %66 = vector.multi_reduction <add>, %65, %cst_32 [1] : vector<8x8xf32> to vector<8xf32>
    %67 = vector.shape_cast %66 : vector<8xf32> to vector<8x1xf32>
    %68 = tpu.reciprocal %67 {approx = true} : vector<8x1xf32> -> vector<8x1xf32>
    %69 = vector.broadcast %68 : vector<8x1xf32> to vector<8x8xf32>
    %70 = arith.mulf %65, %69 : vector<8x8xf32>
    %cst_33 = arith.constant dense<0.000000e+00> : vector<8x8xf32>
    %71 = tpu.matmul %70, %57, %cst_33 {dimension_numbers = #tpu.dot_dimension_numbers<[1], [0], [0], [1], [0, 0, 1, 1], [], []>} : vector<8x8xf32>, vector<8x8xf32>, vector<8x8xf32> -> vector<8x8xf32>
    %72 = vector.extract_strided_slice %18 {offsets = [0, 24], sizes = [8, 8], strides = [1, 1]} : vector<8x32xf32> to vector<8x8xf32>
    %73 = vector.extract_strided_slice %19 {offsets = [0, 24], sizes = [8, 8], strides = [1, 1]} : vector<8x32xf32> to vector<8x8xf32>
    %74 = vector.extract_strided_slice %20 {offsets = [0, 24], sizes = [8, 8], strides = [1, 1]} : vector<8x32xf32> to vector<8x8xf32>
    %cst_34 = arith.constant dense<0.000000e+00> : vector<8x8xf32>
    %75 = tpu.matmul %72, %73, %cst_34 {dimension_numbers = #tpu.dot_dimension_numbers<[1], [1], [0], [0], [0, 0, 1, 0], [], []>} : vector<8x8xf32>, vector<8x8xf32>, vector<8x8xf32> -> vector<8x8xf32>
    %cst_35 = arith.constant 0.353553385 : f32
    %76 = vector.broadcast %cst_35 : f32 to vector<8x8xf32>
    %77 = arith.mulf %75, %76 : vector<8x8xf32>
    %cst_36 = arith.constant dense<0xFF800000> : vector<8xf32>
    %78 = vector.multi_reduction <maximumf>, %77, %cst_36 [1] : vector<8x8xf32> to vector<8xf32>
    %79 = vector.shape_cast %78 : vector<8xf32> to vector<8x1xf32>
    %80 = vector.broadcast %79 : vector<8x1xf32> to vector<8x8xf32>
    %81 = arith.subf %77, %80 : vector<8x8xf32>
    %82 = math.exp %81 : vector<8x8xf32>
    %cst_37 = arith.constant dense<0.000000e+00> : vector<8xf32>
    %83 = vector.multi_reduction <add>, %82, %cst_37 [1] : vector<8x8xf32> to vector<8xf32>
    %84 = vector.shape_cast %83 : vector<8xf32> to vector<8x1xf32>
    %85 = tpu.reciprocal %84 {approx = true} : vector<8x1xf32> -> vector<8x1xf32>
    %86 = vector.broadcast %85 : vector<8x1xf32> to vector<8x8xf32>
    %87 = arith.mulf %82, %86 : vector<8x8xf32>
    %cst_38 = arith.constant dense<0.000000e+00> : vector<8x8xf32>
    %88 = tpu.matmul %87, %74, %cst_38 {dimension_numbers = #tpu.dot_dimension_numbers<[1], [0], [0], [1], [0, 0, 1, 1], [], []>} : vector<8x8xf32>, vector<8x8xf32>, vector<8x8xf32> -> vector<8x8xf32>
    %89 = tpu.concatenate %37, %54, %71, %88 in 1 : vector<8x8xf32>, vector<8x8xf32>, vector<8x8xf32>, vector<8x8xf32> -> vector<8x32xf32>
    %90 = vector.extract_strided_slice %5 {offsets = [8, 0], sizes = [8, 32], strides = [1, 1]} : vector<16x32xf32> to vector<8x32xf32>
    %91 = vector.extract_strided_slice %11 {offsets = [8, 0], sizes = [8, 32], strides = [1, 1]} : vector<16x32xf32> to vector<8x32xf32>
    %92 = vector.extract_strided_slice %17 {offsets = [8, 0], sizes = [8, 32], strides = [1, 1]} : vector<16x32xf32> to vector<8x32xf32>
    %93 = vector.extract_strided_slice %90 {offsets = [0, 0], sizes = [8, 8], strides = [1, 1]} : vector<8x32xf32> to vector<8x8xf32>
    %94 = vector.extract_strided_slice %91 {offsets = [0, 0], sizes = [8, 8], strides = [1, 1]} : vector<8x32xf32> to vector<8x8xf32>
    %95 = vector.extract_strided_slice %92 {offsets = [0, 0], sizes = [8, 8], strides = [1, 1]} : vector<8x32xf32> to vector<8x8xf32>
    %cst_39 = arith.constant dense<0.000000e+00> : vector<8x8xf32>
    %96 = tpu.matmul %93, %94, %cst_39 {dimension_numbers = #tpu.dot_dimension_numbers<[1], [1], [0], [0], [0, 0, 1, 0], [], []>} : vector<8x8xf32>, vector<8x8xf32>, vector<8x8xf32> -> vector<8x8xf32>
    %cst_40 = arith.constant 0.353553385 : f32
    %97 = vector.broadcast %cst_40 : f32 to vector<8x8xf32>
    %98 = arith.mulf %96, %97 : vector<8x8xf32>
    %cst_41 = arith.constant dense<0xFF800000> : vector<8xf32>
    %99 = vector.multi_reduction <maximumf>, %98, %cst_41 [1] : vector<8x8xf32> to vector<8xf32>
    %100 = vector.shape_cast %99 : vector<8xf32> to vector<8x1xf32>
    %101 = vector.broadcast %100 : vector<8x1xf32> to vector<8x8xf32>
    %102 = arith.subf %98, %101 : vector<8x8xf32>
    %103 = math.exp %102 : vector<8x8xf32>
    %cst_42 = arith.constant dense<0.000000e+00> : vector<8xf32>
    %104 = vector.multi_reduction <add>, %103, %cst_42 [1] : vector<8x8xf32> to vector<8xf32>
    %105 = vector.shape_cast %104 : vector<8xf32> to vector<8x1xf32>
    %106 = tpu.reciprocal %105 {approx = true} : vector<8x1xf32> -> vector<8x1xf32>
    %107 = vector.broadcast %106 : vector<8x1xf32> to vector<8x8xf32>
    %108 = arith.mulf %103, %107 : vector<8x8xf32>
    %cst_43 = arith.constant dense<0.000000e+00> : vector<8x8xf32>
    %109 = tpu.matmul %108, %95, %cst_43 {dimension_numbers = #tpu.dot_dimension_numbers<[1], [0], [0], [1], [0, 0, 1, 1], [], []>} : vector<8x8xf32>, vector<8x8xf32>, vector<8x8xf32> -> vector<8x8xf32>
    %110 = vector.extract_strided_slice %90 {offsets = [0, 8], sizes = [8, 8], strides = [1, 1]} : vector<8x32xf32> to vector<8x8xf32>
    %111 = vector.extract_strided_slice %91 {offsets = [0, 8], sizes = [8, 8], strides = [1, 1]} : vector<8x32xf32> to vector<8x8xf32>
    %112 = vector.extract_strided_slice %92 {offsets = [0, 8], sizes = [8, 8], strides = [1, 1]} : vector<8x32xf32> to vector<8x8xf32>
    %cst_44 = arith.constant dense<0.000000e+00> : vector<8x8xf32>
    %113 = tpu.matmul %110, %111, %cst_44 {dimension_numbers = #tpu.dot_dimension_numbers<[1], [1], [0], [0], [0, 0, 1, 0], [], []>} : vector<8x8xf32>, vector<8x8xf32>, vector<8x8xf32> -> vector<8x8xf32>
    %cst_45 = arith.constant 0.353553385 : f32
    %114 = vector.broadcast %cst_45 : f32 to vector<8x8xf32>
    %115 = arith.mulf %113, %114 : vector<8x8xf32>
    %cst_46 = arith.constant dense<0xFF800000> : vector<8xf32>
    %116 = vector.multi_reduction <maximumf>, %115, %cst_46 [1] : vector<8x8xf32> to vector<8xf32>
    %117 = vector.shape_cast %116 : vector<8xf32> to vector<8x1xf32>
    %118 = vector.broadcast %117 : vector<8x1xf32> to vector<8x8xf32>
    %119 = arith.subf %115, %118 : vector<8x8xf32>
    %120 = math.exp %119 : vector<8x8xf32>
    %cst_47 = arith.constant dense<0.000000e+00> : vector<8xf32>
    %121 = vector.multi_reduction <add>, %120, %cst_47 [1] : vector<8x8xf32> to vector<8xf32>
    %122 = vector.shape_cast %121 : vector<8xf32> to vector<8x1xf32>
    %123 = tpu.reciprocal %122 {approx = true} : vector<8x1xf32> -> vector<8x1xf32>
    %124 = vector.broadcast %123 : vector<8x1xf32> to vector<8x8xf32>
    %125 = arith.mulf %120, %124 : vector<8x8xf32>
    %cst_48 = arith.constant dense<0.000000e+00> : vector<8x8xf32>
    %126 = tpu.matmul %125, %112, %cst_48 {dimension_numbers = #tpu.dot_dimension_numbers<[1], [0], [0], [1], [0, 0, 1, 1], [], []>} : vector<8x8xf32>, vector<8x8xf32>, vector<8x8xf32> -> vector<8x8xf32>
    %127 = vector.extract_strided_slice %90 {offsets = [0, 16], sizes = [8, 8], strides = [1, 1]} : vector<8x32xf32> to vector<8x8xf32>
    %128 = vector.extract_strided_slice %91 {offsets = [0, 16], sizes = [8, 8], strides = [1, 1]} : vector<8x32xf32> to vector<8x8xf32>
    %129 = vector.extract_strided_slice %92 {offsets = [0, 16], sizes = [8, 8], strides = [1, 1]} : vector<8x32xf32> to vector<8x8xf32>
    %cst_49 = arith.constant dense<0.000000e+00> : vector<8x8xf32>
    %130 = tpu.matmul %127, %128, %cst_49 {dimension_numbers = #tpu.dot_dimension_numbers<[1], [1], [0], [0], [0, 0, 1, 0], [], []>} : vector<8x8xf32>, vector<8x8xf32>, vector<8x8xf32> -> vector<8x8xf32>
    %cst_50 = arith.constant 0.353553385 : f32
    %131 = vector.broadcast %cst_50 : f32 to vector<8x8xf32>
    %132 = arith.mulf %130, %131 : vector<8x8xf32>
    %cst_51 = arith.constant dense<0xFF800000> : vector<8xf32>
    %133 = vector.multi_reduction <maximumf>, %132, %cst_51 [1] : vector<8x8xf32> to vector<8xf32>
    %134 = vector.shape_cast %133 : vector<8xf32> to vector<8x1xf32>
    %135 = vector.broadcast %134 : vector<8x1xf32> to vector<8x8xf32>
    %136 = arith.subf %132, %135 : vector<8x8xf32>
    %137 = math.exp %136 : vector<8x8xf32>
    %cst_52 = arith.constant dense<0.000000e+00> : vector<8xf32>
    %138 = vector.multi_reduction <add>, %137, %cst_52 [1] : vector<8x8xf32> to vector<8xf32>
    %139 = vector.shape_cast %138 : vector<8xf32> to vector<8x1xf32>
    %140 = tpu.reciprocal %139 {approx = true} : vector<8x1xf32> -> vector<8x1xf32>
    %141 = vector.broadcast %140 : vector<8x1xf32> to vector<8x8xf32>
    %142 = arith.mulf %137, %141 : vector<8x8xf32>
    %cst_53 = arith.constant dense<0.000000e+00> : vector<8x8xf32>
    %143 = tpu.matmul %142, %129, %cst_53 {dimension_numbers = #tpu.dot_dimension_numbers<[1], [0], [0], [1], [0, 0, 1, 1], [], []>} : vector<8x8xf32>, vector<8x8xf32>, vector<8x8xf32> -> vector<8x8xf32>
    %144 = vector.extract_strided_slice %90 {offsets = [0, 24], sizes = [8, 8], strides = [1, 1]} : vector<8x32xf32> to vector<8x8xf32>
    %145 = vector.extract_strided_slice %91 {offsets = [0, 24], sizes = [8, 8], strides = [1, 1]} : vector<8x32xf32> to vector<8x8xf32>
    %146 = vector.extract_strided_slice %92 {offsets = [0, 24], sizes = [8, 8], strides = [1, 1]} : vector<8x32xf32> to vector<8x8xf32>
    %cst_54 = arith.constant dense<0.000000e+00> : vector<8x8xf32>
    %147 = tpu.matmul %144, %145, %cst_54 {dimension_numbers = #tpu.dot_dimension_numbers<[1], [1], [0], [0], [0, 0, 1, 0], [], []>} : vector<8x8xf32>, vector<8x8xf32>, vector<8x8xf32> -> vector<8x8xf32>
    %cst_55 = arith.constant 0.353553385 : f32
    %148 = vector.broadcast %cst_55 : f32 to vector<8x8xf32>
    %149 = arith.mulf %147, %148 : vector<8x8xf32>
    %cst_56 = arith.constant dense<0xFF800000> : vector<8xf32>
    %150 = vector.multi_reduction <maximumf>, %149, %cst_56 [1] : vector<8x8xf32> to vector<8xf32>
    %151 = vector.shape_cast %150 : vector<8xf32> to vector<8x1xf32>
    %152 = vector.broadcast %151 : vector<8x1xf32> to vector<8x8xf32>
    %153 = arith.subf %149, %152 : vector<8x8xf32>
    %154 = math.exp %153 : vector<8x8xf32>
    %cst_57 = arith.constant dense<0.000000e+00> : vector<8xf32>
    %155 = vector.multi_reduction <add>, %154, %cst_57 [1] : vector<8x8xf32> to vector<8xf32>
    %156 = vector.shape_cast %155 : vector<8xf32> to vector<8x1xf32>
    %157 = tpu.reciprocal %156 {approx = true} : vector<8x1xf32> -> vector<8x1xf32>
    %158 = vector.broadcast %157 : vector<8x1xf32> to vector<8x8xf32>
    %159 = arith.mulf %154, %158 : vector<8x8xf32>
    %cst_58 = arith.constant dense<0.000000e+00> : vector<8x8xf32>
    %160 = tpu.matmul %159, %146, %cst_58 {dimension_numbers = #tpu.dot_dimension_numbers<[1], [0], [0], [1], [0, 0, 1, 1], [], []>} : vector<8x8xf32>, vector<8x8xf32>, vector<8x8xf32> -> vector<8x8xf32>
    %161 = tpu.concatenate %109, %126, %143, %160 in 1 : vector<8x8xf32>, vector<8x8xf32>, vector<8x8xf32>, vector<8x8xf32> -> vector<8x32xf32>
    %162 = tpu.concatenate %89, %161 in 0 : vector<8x32xf32>, vector<8x32xf32> -> vector<16x32xf32>
    %c0_59 = arith.constant 0 : index
    %c0_60 = arith.constant 0 : index
    %163 = vector.load %arg6[%c0_59, %c0_60] : memref<32x32xf32, #tpu.memory_space<vmem>>, vector<32x32xf32>
    %cst_61 = arith.constant dense<0.000000e+00> : vector<16x32xf32>
    %164 = tpu.matmul %162, %163, %cst_61 {dimension_numbers = #tpu.dot_dimension_numbers<[1], [0], [0], [1], [0, 0, 1, 1], [], []>} : vector<16x32xf32>, vector<32x32xf32>, vector<16x32xf32> -> vector<16x32xf32>
    %c0_62 = arith.constant 0 : index
    %c0_63 = arith.constant 0 : index
    %165 = vector.load %arg10[%c0_62, %c0_63] : memref<1x32xf32, #tpu.memory_space<vmem>>, vector<1x32xf32>
    %166 = vector.broadcast %165 : vector<1x32xf32> to vector<16x32xf32>
    %167 = arith.addf %164, %166 : vector<16x32xf32>
    %c0_64 = arith.constant 0 : index
    %c0_65 = arith.constant 0 : index
    %168 = vector.load %arg11[%c0_64, %c0_65] : memref<16x32xf32, #tpu.memory_space<vmem>>, vector<16x32xf32>
    tpu.vector_store %arg11[%c0_64, %c0_65], %167 {strides = array<i32>} : memref<16x32xf32, #tpu.memory_space<vmem>>, vector<16x32xf32>,
    return
  }
}

</mosaic_0001>

<bundles_post_ra>
// kernel: _lambda_.1
= control target key start
LH: loop header
LB: loop body
LE: loop exit
PB: predicated region body
PF: predicated region fallthrough
CT: control target
= control target key end

     0   :  { %16 = vsyncpa [#allocation3], 0  ;;  %s1153_s0 = inlined_call_operand.vmem [shape: f32[16,32], index: 0, kind: input, shape index: {}]   ;;  %s1154_s1 = inlined_call_operand.vmem [shape: f32[16,32], index: 1, kind: input, shape index: {}]   ;;  %s1155_s2 = inlined_call_operand.vmem [shape: f32[16,32], index: 2, kind: input, shape index: {}]   ;;  %s1156_s3 = inlined_call_operand.hbm [shape: f32[32,32], index: 3, kind: input, shape index: {}]   ;;  %s1157_s4 = inlined_call_operand.hbm [shape: f32[32,32], index: 4, kind: input, shape index: {}]   ;;  %s1158_s5 = inlined_call_operand.vmem [shape: f32[32,32], index: 5, kind: input, shape index: {}]   ;;  %s1159_s6 = inlined_call_operand.vmem [shape: f32[32,32], index: 6, kind: input, shape index: {}]   ;;  %s1160_s7 = inlined_call_operand.vmem [shape: f32[1,32], index: 7, kind: input, shape index: {}, may-alias: {7,8,9,10}]   ;;  %s1161_s8 = inlined_call_operand.vmem [shape: f32[1,32], index: 8, kind: input, shape index: {}, may-alias: {7,8,9,10}]   ;;  %s1162_s9 = inlined_call_operand.vmem [shape: f32[1,32], index: 9, kind: input, shape index: {}, may-alias: {7,8,9,10}]   ;;  %s1163_s10 = inlined_call_operand.vmem [shape: f32[1,32], index: 10, kind: input, shape index: {}, may-alias: {7,8,9,10}]   ;;  %s1164_s11 = inlined_call_operand.vmem [shape: f32[16,32], index: 11, kind: output, shape index: {}]  }
   0x1   :  { %s28_s19 = sshll.u32 %s1156_s3, 4  ;;  %s29_s19 = int_to_ptr.hbm [resolvable:$true] %s28_s19 }
   0x2   :  { %17 = vsyncpa [#allocation5], 0  ;;  %s919_s20 = smov [#allocation2]   ;;  %s41_s24 = sshll.u32 %s1157_s4, 4  ;;  %s42_s24 = int_to_ptr.hbm [resolvable:$true] %s41_s24 }
   0x3   :  { %s30_s21 = sshll.u32 %s919_s20, 4  ;;  %s920_s25 = smov 128   ;;  %s31_s21 = int_to_ptr.vmem [resolvable:$true] %s30_s21 }
   0x4   :  { %s921_s26 = smov 8   ;;  %s922_s27 = smov [#allocation4]  }
   0x5   :  { %36 = dma.hbm_to_vmem [thread:$0]  %s29_s19, 512, %s31_s21, [#allocation3], %s920_s25, %s920_s25, %s921_s26  }
   0x6   :  { %s43_s28 = sshll.u32 %s922_s27, 4  ;;  %s44_s28 = int_to_ptr.vmem [resolvable:$true] %s43_s28 }
   0x7   :  { %49 = dma.hbm_to_vmem [thread:$0]  %s42_s24, 512, %s44_s28, [#allocation5], %s920_s25, %s920_s25, %s921_s26  }
   0x8   :  { %915 = dma.done.wait [#allocation3], 512  }
   0x9   :  { %916 = vsyncadd [#allocation3], 4294966784 }
   0xa   :  { %917 = dma.done.wait [#allocation5], 512  }
   0xb   :  { %918 = vsyncadd [#allocation5], 4294966784  ;;  %v115_v0 = vld [vmem:[#allocation4 + $0x18] sm:$0xff]  ;;  %v114_v1 = vld [vmem:[#allocation4 + $0x10] sm:$0xff]  ;;  %vm80_vm0 = vcmask 261120   ;;  %vm188_vm1 = vcmask 64512  }
   0xc   :  { %v75_v2 = vld [vmem:[#allocation2 + $0x18] sm:$0xff]  ;;  %138 = vmatpush.msra.mxu1 %v115_v0  ;;  %v74_v3 = vld [vmem:[#allocation2 + $0x10] sm:$0xff]  ;;  %v113_v4 = vld [vmem:[#allocation4 + $0x8] sm:$0xff]  ;;  %818 = vmatpush.msra.mxu2 %v115_v0  ;;  %s923_s3 = smov 112   ;;  %s924_s4 = smov 120   ;;  %vm462_vm2 = vcmask 130048  }
   0xd   :  { %99 = vmatpush.msra.mxu0 %v75_v2  ;;  %v73_v5 = vld [vmem:[#allocation2 + $0x8] sm:$0xff]  ;;  %v112_v6 = vld [vmem:[#allocation4] sm:$0xff]  ;;  %v154_v11 = vld [vmem:[%s1158_s5 + $0x18] sm:$0xff]  ;;  %s927_s30 = smov 24   ;;  %vm464_vm3 = vcmask 195584  }
   0xe   :  { %139 = vmatpush.msra.mxu1 %v114_v1  ;;  %v72_v7 = vld [vmem:[#allocation2] sm:$0xff]  ;;  %819 = vmatpush.msra.mxu2 %v114_v1  ;;  %v111_v10 = vld [vmem:[%s1154_s1 + $0x8] sm:$0xff]  ;;  %v153_v12 = vld [vmem:[%s1158_s5 + $0x10] sm:$0xff] }
   0xf   :  { %100 = vmatpush.msra.mxu0 %v74_v3  ;;  %v110_v8 = vld [vmem:[%s1154_s1] sm:$0xff]  ;;  %v152_v13 = vld [vmem:[%s1158_s5 + $0x8] sm:$0xff] }
  0x10   :  { %140 = vmatpush.msra.mxu1 %v113_v4  ;;  %v70_v9 = vld [vmem:[%s1153_s0] sm:$0xff]  ;;  %820 = vmatpush.msra.mxu2 %v113_v4  ;;  %v71_v16 = vld [vmem:[%s1153_s0 + $0x8] sm:$0xff]  ;;  %s925_s0 = smov 104  }
  0x11   :  { %101 = vmatpush.msra.mxu0 %v73_v5  ;;  %v151_v14 = vld [vmem:[%s1158_s5] sm:$0xff]  ;;  %v150_v2 = vld [vmem:[%s1155_s2 + $0x8] sm:$0xff] }
  0x12   :  { %141 = vmatpush.msra.mxu1 %v112_v6  ;;  %821 = vmatpush.msra.mxu2 %v112_v6  ;;  %v149_v15 = vld [vmem:[%s1155_s2] sm:$0xff]  ;;  %s926_s2 = smov 16  }
  0x13   :  { %102 = vmatpush.msra.mxu0 %v72_v7  ;;  %788 = vmatmul.msk.f32.vlgmr.msra.gmra.mxu1 %vm80_vm0, %v110_v8  ;;  %v831_v17 = vld [vmem:[%s1161_s8] ss:$0 sm:$0xff] }
  0x14   :  { %786 = vmatmul.msk.f32.vlgmr.msra.gmra.mxu0 %vm80_vm0, %v70_v9  ;;  %789 = vmatmul.msk.f32.vlgmr.msra.gmra.mxu2 %vm80_vm0, %v111_v10  ;;  %v832_v18 = vld [vmem:[%s1160_s7] ss:$0 sm:$0xff] }
  0x15   :  { %177 = vmatpush.msrb.mxu2 %v154_v11  ;;  %v1045_v25 = vld [vmem:[%s1162_s9] ss:$0 sm:$0xff] }
  0x17   :  { %178 = vmatpush.msrb.mxu2 %v153_v12 }
  0x19   :  { %179 = vmatpush.msrb.mxu2 %v152_v13 }
  0x1b   :  { %180 = vmatpush.msrb.mxu2 %v151_v14 }
  0x1c   :  { %790 = vmatmul.msk.f32.vlgmr.msrb.gmra.mxu2 %vm80_vm0, %v149_v15  ;;  %787 = vmatmul.msk.f32.gmra.mxu0 %vm80_vm0, %v71_v16 }
  0x24   :  { %791 = vmatmul.msk.f32.gmra.mxu2 %vm80_vm0, %v150_v2 }
  0x90   :  { %v143_v19 = vpop.f32.mrf.mxu1 }
  0x91   :  { %v104_v20 = vpop.f32.mrf.mxu0  ;;  %v144_v21 = vadd.f32 %v831_v17, %v143_v19 }
  0x92   :  { %v105_v22 = vadd.f32 %v832_v18, %v104_v20 }
  0x93   :  { %319 = vrot.lane.b32.xlu2 %v144_v21, %s923_s3  ;;  %252 = vrot.lane.b32.xlu1 %v144_v21, %s924_s4 }
  0x94   :  { %792 = vmatpush.xpose.msk.msra.mxu3 %vm188_vm1, %v144_v21 }
  0x97   :  { %793 = vmatmul.msk.f32.vlgmr.msra.gmra.mxu3 %vm188_vm1, %v105_v22  ;;  %v146_v23 = vpop.f32.mrf.mxu2 }
  0x98   :  { %v147_v24 = vadd.f32 %v831_v17, %v146_v23 }
  0x99   :  { %v107_v30 = vpop.f32.mrf.mxu0 }
  0x9a   :  { %v108_v31 = vadd.f32 %v832_v18, %v107_v30 }
  0x9b   :  { %385 = vrot.lane.b32.xlu2 %v144_v21, %s925_s0  ;;  %250 = vrot.lane.b32.xlu1 %v105_v22, %s924_s4 }
  0x9f   :  { %v182_v26 = vpop.f32.mrf.mxu2 }
  0xa0   :  { %v1048_v27 = vadd.f32 %v1045_v25, %v182_v26 }
  0xa2   :  { %245 = vmatpush.msrb.mxu3 %v1048_v27 }
  0xa3   :  { %383 = vrot.lane.b32.xlu1 %v105_v22, %s925_s0  ;;  %529 = vrot.lane.b32.xlu2 %v147_v24, %s924_s4 }
  0xab   :  { %596 = vrot.lane.b32.xlu2 %v147_v24, %s923_s3  ;;  %527 = vrot.lane.b32.xlu1 %v108_v31, %s924_s4 }
  0xb3   :  { %594 = vrot.lane.b32.xlu2 %v108_v31, %s923_s3  ;;  %662 = vrot.lane.b32.xlu1 %v147_v24, %s925_s0 }
  0xed   :  { %v320_v28 = vpop.permute.xlu2 %319 }
  0xee   :  { %798 = vmatpush.xpose.msk.msrb.mxu1 %vm188_vm1, %v320_v28 }
  0xf2   :  { %804 = vmatpush.xpose.msk.msra.mxu1 %vm188_vm1, %v147_v24 }
  0xf5   :  { %v386_v37 = vpop.permute.xlu2 %385 }
  0xfd   :  { %v530_v39 = vpop.permute.xlu2 %529 }
 0x105   :  { %v253_v29 = vpop.permute.xlu1 %252  ;;  %v597_v43 = vpop.permute.xlu2 %596 }
 0x106   :  { %795 = vmatpush.xpose.msk.msra.mxu3 %vm188_vm1, %v253_v29 }
 0x10d   :  { %v595_v44 = vpop.permute.xlu2 %594  ;;  %v251_v45 = vpop.permute.xlu1 %250 }
 0x115   :  { %v384_v47 = vpop.permute.xlu1 %383 }
 0x11a   :  { %v212_v32 = vpop.f32.mrf.mxu3 }
 0x11b   :  { %v215_v33 = vmul.f32 0.35355338, %v212_v32 }
 0x11d   :  { %v216_v34 = vsel %vm188_vm1, %v215_v33, -inf  ;;  %v528_v50 = vpop.permute.xlu1 %527 }
 0x11e   :  { %217 = vmax.xlane.f32.xlu0 %v216_v34 }
 0x125   :  { %v663_v54 = vpop.permute.xlu1 %662 }
 0x132   :  { %317 = vrot.lane.b32.xlu0 %v105_v22, %s923_s3 }
 0x191   :  { %v218_v35 = vpop.xlane.xlu0 %217 }
 0x192   :  { %v219_v36 = vsub.f32 %v215_v33, %v218_v35 }
 0x194   :  { %v220_v38 = vmul.f32 1.442695, %v219_v36 }
 0x196   :  { %835 = vpow2.f32 %v220_v38 }
 0x19c   :  { %v836_v40 = vpop.eup %835 }
 0x19d   :  { %v222_v41 = vsel %vm188_vm1, %v836_v40, 0.0 }
 0x19e   :  { %223 = vadd.xlane.f32.xlu0 %v222_v41  ;;  %v185_v41 = vpop.f32.mrf.mxu2 }
 0x1a4   :  { %v318_v42 = vpop.permute.xlu0 %317 }
 0x1a5   :  { %799 = vmatmul.msk.f32.vlgmr.msrb.gmra.mxu1 %vm188_vm1, %v318_v42  ;;  %v186_v42 = vadd.f32 %v1045_v25, %v185_v41 }
 0x1a6   :  { %810 = vmatpush.xpose.msk.msrb.mxu1 %vm188_vm1, %v597_v43 }
 0x1ad   :  { %805 = vmatmul.msk.f32.vlgmr.msra.gmra.mxu1 %vm188_vm1, %v108_v31 }
 0x1b2   :  { %660 = vrot.lane.b32.xlu0 %v108_v31, %s925_s0 }
 0x1b5   :  { %811 = vmatmul.msk.f32.vlgmr.msrb.gmra.mxu1 %vm188_vm1, %v595_v44 }
 0x211   :  { %v224_v46 = vpop.xlane.xlu0 %223 }
 0x212   :  { %837 = vrcp.f32 %v224_v46 }
 0x218   :  { %v838_v48 = vpop.eup %837 }
 0x219   :  { %v226_v49 = vmul.f32 %v838_v48, %v836_v40 }
 0x21b   :  { %794 = vmatmul.msk.f32.vlgmr.msrb.gmra.mxu3 %vm188_vm1, %v226_v49 }
 0x21c   :  { %801 = vmatpush.xpose.msk.msrb.mxu3 %vm188_vm1, %v386_v37 }
 0x222   :  { %v342_v51 = vpop.f32.mrf.mxu1 }
 0x223   :  { %v345_v52 = vmul.f32 0.35355338, %v342_v51  ;;  %796 = vmatmul.msk.f32.vlgmr.msra.gmra.mxu3 %vm188_vm1, %v251_v45 }
 0x224   :  { %807 = vmatpush.xpose.msk.msra.mxu3 %vm188_vm1, %v530_v39  ;;  %v661_v61 = vpop.permute.xlu0 %660 }
 0x225   :  { %v346_v53 = vsel %vm188_vm1, %v345_v52, -inf }
 0x226   :  { %347 = vmax.xlane.f32.xlu2 %v346_v53 }
 0x22a   :  { %v489_v55 = vpop.f32.mrf.mxu1 }
 0x22b   :  { %v492_v56 = vmul.f32 0.35355338, %v489_v55  ;;  %802 = vmatmul.msk.f32.vlgmr.msrb.gmra.mxu3 %vm188_vm1, %v384_v47 }
 0x22c   :  { %813 = vmatpush.xpose.msk.msrb.mxu3 %vm188_vm1, %v663_v54 }
 0x22d   :  { %v493_v57 = vsel %vm188_vm1, %v492_v56, -inf }
 0x22e   :  { %494 = vmax.xlane.f32.xlu2 %v493_v57 }
 0x232   :  { %v619_v58 = vpop.f32.mrf.mxu1 }
 0x233   :  { %v1074_v59 = vmul.f32 0.35355338, %v619_v58  ;;  %808 = vmatmul.msk.f32.vlgmr.msra.gmra.mxu3 %vm188_vm1, %v528_v50 }
 0x235   :  { %v623_v60 = vsel %vm188_vm1, %v1074_v59, -inf }
 0x236   :  { %624 = vmax.xlane.f32.xlu0 %v623_v60 }
 0x23b   :  { %814 = vmatmul.msk.f32.vlgmr.msrb.gmra.mxu3 %vm188_vm1, %v661_v61 }
 0x299   :  { %v348_v62 = vpop.xlane.xlu2 %347 }
 0x29a   :  { %v349_v63 = vsub.f32 %v345_v52, %v348_v62 }
 0x29c   :  { %v350_v0 = vmul.f32 1.442695, %v349_v63 }
 0x29e   :  { %839 = vpow2.f32 %v350_v0  ;;  %v1080_v1 = vpop.f32.mrf.mxu3 }
 0x2a1   :  { %v495_v4 = vpop.xlane.xlu2 %494 }
 0x2a2   :  { %v496_v8 = vsub.f32 %v492_v56, %v495_v4 }
 0x2a4   :  { %v1086_v3 = vpop.eup %839  ;;  %v497_v10 = vmul.f32 1.442695, %v496_v8 }
 0x2a5   :  { %v352_v5 = vsel %vm188_vm1, %v1086_v3, 0.0 }
 0x2a6   :  { %353 = vadd.xlane.f32.xlu0 %v352_v5  ;;  %v275_v6 = vpop.f32.mrf.mxu3  ;;  %841 = vpow2.f32 %v497_v10 }
 0x2a7   :  { %v278_v7 = vmul.f32 0.35355338, %v275_v6 }
 0x2a9   :  { %v279_v9 = vsel %vm188_vm1, %v278_v7, -inf  ;;  %v625_v22 = vpop.xlane.xlu0 %624 }
 0x2aa   :  { %280 = vmax.xlane.f32.xlu1 %v279_v9  ;;  %v626_v43 = vsub.f32 %v1074_v59, %v625_v22  ;;  %v742_v22 = vld [vmem:[%s1159_s6 + $0x8] sm:$0xff] }
 0x2ac   :  { %v1092_v14 = vpop.eup %841  ;;  %v627_v45 = vmul.f32 1.442695, %v626_v43 }
 0x2ad   :  { %v499_v17 = vsel %vm188_vm1, %v1092_v14, 0.0 }
 0x2ae   :  { %v408_v11 = vpop.f32.mrf.mxu3 }
 0x2af   :  { %v411_v12 = vmul.f32 0.35355338, %v408_v11 }
 0x2b1   :  { %v412_v13 = vsel %vm188_vm1, %v411_v12, -inf }
 0x2b2   :  { %413 = vmax.xlane.f32.xlu0 %v412_v13 }
 0x2b6   :  { %v552_v15 = vpop.f32.mrf.mxu3 }
 0x2b7   :  { %v555_v16 = vmul.f32 0.35355338, %v552_v15 }
 0x2b9   :  { %v556_v18 = vsel %vm188_vm1, %v555_v16, -inf }
 0x2ba   :  { %500 = vadd.xlane.f32.xlu0 %v499_v17  ;;  %557 = vmax.xlane.f32.xlu1 %v556_v18 }
 0x2be   :  { %v685_v19 = vpop.f32.mrf.mxu3 }
 0x2bf   :  { %v688_v20 = vmul.f32 0.35355338, %v685_v19 }
 0x2c1   :  { %v689_v21 = vsel %vm188_vm1, %v688_v20, -inf }
 0x2c2   :  { %690 = vmax.xlane.f32.xlu2 %v689_v21  ;;  %v743_v21 = vld [vmem:[%s1159_s6 + $0x10] sm:$0xff] }
 0x2ce   :  { %423 = vrot.lane.b32.xlu0 %v1048_v27, %s925_s0 }
 0x319   :  { %v354_v23 = vpop.xlane.xlu0 %353 }
 0x31d   :  { %v281_v24 = vpop.xlane.xlu1 %280 }
 0x31e   :  { %v282_v26 = vsub.f32 %v278_v7, %v281_v24 }
 0x320   :  { %v283_v28 = vmul.f32 1.442695, %v282_v26 }
 0x322   :  { %843 = vpow2.f32 %v283_v28 }
 0x325   :  { %v414_v29 = vpop.xlane.xlu0 %413 }
 0x326   :  { %v415_v30 = vsub.f32 %v411_v12, %v414_v29 }
 0x328   :  { %v844_v31 = vpop.eup %843  ;;  %v416_v32 = vmul.f32 1.442695, %v415_v30 }
 0x329   :  { %v285_v33 = vsel %vm188_vm1, %v844_v31, 0.0 }
 0x32a   :  { %845 = vpow2.f32 %v416_v32  ;;  %286 = vadd.xlane.f32.xlu1 %v285_v33 }
 0x32d   :  { %v558_v34 = vpop.xlane.xlu1 %557  ;;  %v501_v51 = vpop.xlane.xlu0 %500 }
 0x32e   :  { %v559_v35 = vsub.f32 %v555_v16, %v558_v34 }
 0x330   :  { %v846_v36 = vpop.eup %845  ;;  %v560_v37 = vmul.f32 1.442695, %v559_v35 }
 0x331   :  { %v418_v38 = vsel %vm188_vm1, %v846_v36, 0.0 }
 0x332   :  { %847 = vpow2.f32 %v560_v37  ;;  %419 = vadd.xlane.f32.xlu2 %v418_v38 }
 0x333   :  { %849 = vpow2.f32 %v627_v45 }
 0x335   :  { %v691_v44 = vpop.xlane.xlu2 %690 }
 0x336   :  { %v692_v46 = vsub.f32 %v688_v20, %v691_v44  ;;  %v744_v20 = vld [vmem:[%s1159_s6 + $0x18] sm:$0xff] }
 0x337   :  { %767 = vmatpush.msra.mxu1 %v744_v20 }
 0x338   :  { %v848_v39 = vpop.eup %847  ;;  %v693_v47 = vmul.f32 1.442695, %v692_v46 }
 0x339   :  { %v562_v40 = vsel %vm188_vm1, %v848_v39, 0.0  ;;  %v850_v48 = vpop.eup %849  ;;  %768 = vmatpush.msra.mxu1 %v743_v21 }
 0x33a   :  { %563 = vadd.xlane.f32.xlu0 %v562_v40  ;;  %851 = vpow2.f32 %v693_v47  ;;  %v629_v49 = vsel %vm188_vm1, %v850_v48, 0.0 }
 0x33b   :  { %853 = vrcp.f32 %v354_v23  ;;  %769 = vmatpush.msra.mxu1 %v742_v22  ;;  %v741_v23 = vld [vmem:[%s1159_s6] sm:$0xff] }
 0x33c   :  { %855 = vrcp.f32 %v501_v51 }
 0x33d   :  { %770 = vmatpush.msra.mxu1 %v741_v23 }
 0x340   :  { %v424_v56 = vpop.permute.xlu0 %423 }
 0x343   :  { %291 = vrot.lane.b32.xlu1 %v1048_v27, %s924_s4 }
 0x34a   :  { %357 = vrot.lane.b32.xlu2 %v1048_v27, %s923_s3  ;;  %v852_v27 = vpop.eup %851 }
 0x34b   :  { %v695_v25 = vsel %vm188_vm1, %v852_v27, 0.0  ;;  %v854_v53 = vpop.eup %853 }
 0x34c   :  { %v356_v54 = vmul.f32 %v854_v53, %v1086_v3  ;;  %v856_v57 = vpop.eup %855 }
 0x34d   :  { %v503_v59 = vmul.f32 %v856_v57, %v1092_v14 }
 0x34e   :  { %568 = vrot.lane.b32.xlu0 %v186_v42, %s924_s4 }
 0x356   :  { %634 = vrot.lane.b32.xlu0 %v186_v42, %s923_s3 }
 0x35e   :  { %700 = vrot.lane.b32.xlu0 %v186_v42, %s925_s0 }
 0x36d   :  { %630 = vadd.xlane.f32.xlu1 %v629_v49 }
 0x373   :  { %696 = vadd.xlane.f32.xlu2 %v695_v25 }
 0x39d   :  { %v287_v52 = vpop.xlane.xlu1 %286 }
 0x39e   :  { %857 = vrcp.f32 %v287_v52 }
 0x3a4   :  { %v858_v58 = vpop.eup %857 }
 0x3a5   :  { %v420_v50 = vpop.xlane.xlu2 %419  ;;  %v289_v61 = vmul.f32 %v858_v58, %v844_v31 }
 0x3a6   :  { %859 = vrcp.f32 %v420_v50 }
 0x3ac   :  { %v860_v63 = vpop.eup %859 }
 0x3ad   :  { %v358_v55 = vpop.permute.xlu2 %357  ;;  %v564_v62 = vpop.xlane.xlu0 %563  ;;  %v422_v0 = vmul.f32 %v860_v63, %v846_v36 }
 0x3ae   :  { %378 = vmatpush.msra.mxu2 %v358_v55  ;;  %861 = vrcp.f32 %v564_v62 }
 0x3af   :  { %800 = vmatmul.msk.f32.vlgmr.msra.gmra.mxu2 %vm188_vm1, %v356_v54 }
 0x3b0   :  { %522 = vmatpush.msrb.mxu2 %v186_v42 }
 0x3b4   :  { %v862_v3 = vpop.eup %861 }
 0x3b5   :  { %v292_v60 = vpop.permute.xlu1 %291  ;;  %v566_v4 = vmul.f32 %v862_v3, %v848_v39 }
 0x3b6   :  { %312 = vmatpush.msrb.mxu0 %v292_v60 }
 0x3b7   :  { %797 = vmatmul.msk.f32.vlgmr.msrb.gmra.mxu0 %vm188_vm1, %v289_v61  ;;  %806 = vmatmul.msk.f32.vlgmr.msrb.gmra.mxu2 %vm188_vm1, %v503_v59 }
 0x3b8   :  { %444 = vmatpush.msra.mxu0 %v424_v56 }
 0x3bf   :  { %803 = vmatmul.msk.f32.vlgmr.msra.gmra.mxu0 %vm188_vm1, %v422_v0 }
 0x3c0   :  { %v569_v2 = vpop.permute.xlu0 %568 }
 0x3c1   :  { %589 = vmatpush.msrb.mxu0 %v569_v2 }
 0x3c7   :  { %809 = vmatmul.msk.f32.vlgmr.msrb.gmra.mxu0 %vm188_vm1, %v566_v4 }
 0x3c8   :  { %v635_v5 = vpop.permute.xlu0 %634 }
 0x3c9   :  { %655 = vmatpush.msra.mxu2 %v635_v5 }
 0x3d0   :  { %v701_v6 = vpop.permute.xlu0 %700 }
 0x3d1   :  { %721 = vmatpush.msra.mxu0 %v701_v6 }
 0x3e0   :  { %v631_v7 = vpop.xlane.xlu1 %630 }
 0x3e1   :  { %863 = vrcp.f32 %v631_v7 }
 0x3e6   :  { %v697_v8 = vpop.xlane.xlu2 %696 }
 0x3e7   :  { %v864_v9 = vpop.eup %863  ;;  %865 = vrcp.f32 %v697_v8 }
 0x3e8   :  { %v633_v10 = vmul.f32 %v864_v9, %v850_v48 }
 0x3ea   :  { %812 = vmatmul.msk.f32.vlgmr.msra.gmra.mxu2 %vm188_vm1, %v633_v10 }
 0x3ed   :  { %v866_v11 = vpop.eup %865 }
 0x3ee   :  { %v699_v12 = vmul.f32 %v866_v11, %v852_v27 }
 0x3f0   :  { %815 = vmatmul.msk.f32.vlgmr.msra.gmra.mxu0 %vm188_vm1, %v699_v12 }
 0x432   :  { %v380_v13 = vpop.f32.mrf.mxu2 }
 0x433   :  { %454 = vrot.lane.b32.xlu1 %v380_v13, %s926_s2 }
 0x434   :  { %v314_v14 = vpop.f32.mrf.mxu0 }
 0x435   :  { %450 = vrot.lane.b32.xlu0 %v314_v14, %s921_s26 }
 0x43a   :  { %v524_v17 = vpop.f32.mrf.mxu2 }
 0x43c   :  { %v446_v15 = vpop.f32.mrf.mxu0 }
 0x43d   :  { %458 = vrot.lane.b32.xlu0 %v446_v15, %s927_s30 }
 0x444   :  { %v591_v16 = vpop.f32.mrf.mxu0 }
 0x445   :  { %727 = vrot.lane.b32.xlu2 %v591_v16, %s921_s26 }
 0x46d   :  { %v657_v18 = vpop.f32.mrf.mxu2  ;;  %v723_v19 = vpop.f32.mrf.mxu0 }
 0x46e   :  { %731 = vrot.lane.b32.xlu0 %v657_v18, %s926_s2 }
 0x476   :  { %735 = vrot.lane.b32.xlu0 %v723_v19, %s927_s30 }
 0x49f   :  { %v728_v33 = vpop.permute.xlu2 %727 }
 0x4a0   :  { %v738_v34 = vsel %vm188_vm1, %v524_v17, %v728_v33 }
 0x4a5   :  { %v455_v28 = vpop.permute.xlu1 %454 }
 0x4a7   :  { %v451_v24 = vpop.permute.xlu0 %450 }
 0x4a8   :  { %v461_v26 = vsel %vm188_vm1, %v1080_v1, %v451_v24  ;;  %v834_v1 = vld [vmem:[%s1163_s10] ss:$0 sm:$0xff] }
 0x4a9   :  { %v463_v29 = vsel %vm462_vm2, %v461_v26, %v455_v28 }
 0x4af   :  { %v459_v30 = vpop.permute.xlu0 %458 }
 0x4b0   :  { %v465_v31 = vsel %vm464_vm3, %v463_v29, %v459_v30 }
 0x4b1   :  { %816 = vmatmul.msk.f32.vlgmr.msra.gmra.mxu1 %vm80_vm0, %v465_v31 }
 0x4e0   :  { %v732_v32 = vpop.permute.xlu0 %731 }
 0x4e1   :  { %v739_v35 = vsel %vm462_vm2, %v738_v34, %v732_v32 }
 0x4e8   :  { %v736_v36 = vpop.permute.xlu0 %735 }
 0x4e9   :  { %v740_v37 = vsel %vm464_vm3, %v739_v35, %v736_v36 }
 0x4ea   :  { %817 = vmatmul.msk.f32.gmra.mxu1 %vm80_vm0, %v740_v37 }
 0x52e   :  { %v772_v38 = vpop.f32.mrf.mxu1 }
 0x52f   :  { %v773_v39 = vadd.f32 %v834_v1, %v772_v38 }
 0x531   :  { %778 = vst.msk [vmem:[%s1164_s11] sm:$0xff] %vm80_vm0, %v773_v39 }
 0x567   :  { %v775_v40 = vpop.f32.mrf.mxu1 }
 0x568   :  { %v776_v41 = vadd.f32 %v834_v1, %v775_v40 }
 0x56a   :  { %779 = vst.msk [vmem:[%s1164_s11 + $0x8] sm:$0xff] %vm80_vm0, %v776_v41 }
 0x56b   :  { %784 = vsyncpa [#allocation3], 1 }
 0x56c   :  { %785 = vsyncpa [#allocation5], 1 }

</bundles_post_ra>
